<compile_context>
chip_gen: v7x
topology: tpu7x:2x2x1
jax: 0.10.0
libtpu: 0.0.40
codegen_flags: <defaults>
</compile_context>

<pallas_src>
import functools

import jax
import jax.numpy as jnp
from jax.experimental import pallas as pl
from jax.experimental.pallas import tpu as pltpu

SMOOTH = 1e-06


def _iou_sums_kernel(yp_ref, y_ref, num_ref, a_ref, b_ref, *, rem):
    """Accumulate per-row sums of y*yp, y*y, yp*yp into the output refs.

    The output blocks have a constant index map, so they stay resident in
    VMEM across the whole reduction grid and act as accumulators.

    rem: number of valid columns in the last tile, or None if every tile is
    fully populated (no masking needed).  Static (bound via functools.partial).
    """
    k = pl.program_id(0)
    last = pl.num_programs(0) - 1

    @pl.when(k == 0)
    def _init():
        num_ref[...] = jnp.zeros_like(num_ref)
        a_ref[...] = jnp.zeros_like(a_ref)
        b_ref[...] = jnp.zeros_like(b_ref)

    def _accumulate(valid_cols):
        yp = yp_ref[...].astype(jnp.float32)
        y = y_ref[...].astype(jnp.float32)
        if valid_cols is not None:
            # Mask out-of-bounds lanes of the ragged last tile (OOB block
            # contents are unspecified).  jnp.where avoids NaN propagation.
            col = jax.lax.broadcasted_iota(jnp.int32, yp.shape, 1)
            keep = col < valid_cols
            yp = jnp.where(keep, yp, 0.0)
            y = jnp.where(keep, y, 0.0)
        num_ref[...] += jnp.sum(y * yp, axis=1, keepdims=True)
        a_ref[...] += jnp.sum(y * y, axis=1, keepdims=True)
        b_ref[...] += jnp.sum(yp * yp, axis=1, keepdims=True)

    if rem is None:
        # Tile divides the reduction axis exactly: no masking anywhere.
        _accumulate(None)
    else:
        @pl.when(k != last)
        def _full_tiles():
            _accumulate(None)

        @pl.when(k == last)
        def _ragged_tile():
            _accumulate(rem)


def _pick_row_split(b, n):
    """Sublane-dense row split: view each batch row as r sub-rows."""
    if b >= 8:
        return 1
    for r in (8, 4, 2):
        if n % r == 0:
            return r
    return 1


def _pick_tile_n(br, nr, itemsize):
    """Largest lane tile whose double-buffered inputs fit a conservative
    VMEM budget (safe across v5e/v6e/v7x)."""
    budget = 8 * 1024 * 1024          # 2 inputs x 2 pipeline buffers
    max_cols = max(128, budget // (4 * br * itemsize))
    return min(nr, max_cols, 32768)


@functools.partial(jax.jit, static_argnames=("tile_n",))
def iou_loss_pallas(y_pred, y, tile_n=None):
    assert y_pred.shape == y.shape
    b = y.shape[0]
    # Native dtype -- no wrapper cast; flatten is a free contiguous reshape.
    yp2 = y_pred.reshape(b, -1)
    y2 = y.reshape(b, -1)
    n = yp2.shape[1]

    # Sublane-dense layout for small batch.
    r = _pick_row_split(b, n)
    br = b * r
    nr = n // r
    yp2 = yp2.reshape(br, nr)
    y2 = y2.reshape(br, nr)

    itemsize = jnp.dtype(yp2.dtype).itemsize
    tile = _pick_tile_n(br, nr, itemsize) if tile_n is None else int(tile_n)
    if tile >= nr:
        tile = nr                      # full reduction axis: always legal
    else:
        tile = max(128, (tile // 128) * 128)   # lane-aligned tile

    n_tiles = pl.cdiv(nr, tile)
    rem = nr - (n_tiles - 1) * tile
    rem = None if rem == tile else rem  # None => no ragged last tile

    row_sums = jax.ShapeDtypeStruct((br, 1), jnp.float32)
    num_r, a_r, b_r = pl.pallas_call(
        functools.partial(_iou_sums_kernel, rem=rem),
        out_shape=(row_sums, row_sums, row_sums),
        grid_spec=pltpu.PrefetchScalarGridSpec(
            num_scalar_prefetch=0,
            grid=(n_tiles,),
            in_specs=[
                pl.BlockSpec((br, tile), lambda k: (0, k)),
                pl.BlockSpec((br, tile), lambda k: (0, k)),
            ],
            out_specs=(
                pl.BlockSpec((br, 1), lambda k: (0, 0)),
                pl.BlockSpec((br, 1), lambda k: (0, 0)),
                pl.BlockSpec((br, 1), lambda k: (0, 0)),
            ),
        ),
        compiler_params=pltpu.CompilerParams(
            dimension_semantics=("arbitrary",),
            vmem_limit_bytes=32 * 1024 * 1024,
        ),
    )(yp2, y2)

    # Tiny JAX epilogue: fold sub-rows back to per-batch sums, IoU, mean.
    num = num_r.reshape(b, r).sum(axis=1)
    a = a_r.reshape(b, r).sum(axis=1)
    bb = b_r.reshape(b, r).sum(axis=1)
    den = a + bb - num
    quot = 1.0 - (num + SMOOTH) / (den + SMOOTH)
    return jnp.mean(quot)


def iou_loss_ref(y_pred, y, smooth=SMOOTH):
    b = y.shape[0]
    yp2 = y_pred.reshape(b, -1).astype(jnp.float32)
    y2 = y.reshape(b, -1).astype(jnp.float32)
    num = jnp.sum(y2 * yp2, axis=1)
    a = jnp.sum(y2 * y2, axis=1)
    bb = jnp.sum(yp2 * yp2, axis=1)
    den = a + bb - num
    return jnp.mean(1.0 - (num + smooth) / (den + smooth))


if __name__ == "__main__":
    key = jax.random.PRNGKey(0)
    k1, k2, k3, k4 = jax.random.split(key, 4)

    # Primary example: NCHW [2, 4, 16, 16], as in the PyTorch module.
    y_pred = jax.nn.sigmoid(jax.random.normal(k1, (2, 4, 16, 16), jnp.float32))
    y = (jax.random.uniform(k2, (2, 4, 16, 16)) > 0.5).astype(jnp.float32)
    loss = iou_loss_pallas(y_pred, y)
    jax.block_until_ready(loss)
    ref = iou_loss_ref(y_pred, y)
    assert jnp.allclose(loss, ref, rtol=1e-5, atol=1e-6), (loss, ref)

    # Exercise the ragged-last-tile (masked, unpadded) path with a forced
    # small tile: N = 2*5*16*16 -> nr = 160, tile = 128 -> rem = 32.
    y_pred2 = jax.nn.sigmoid(jax.random.normal(k3, (2, 5, 16, 16), jnp.float32))
    y2 = (jax.random.uniform(k4, (2, 5, 16, 16)) > 0.5).astype(jnp.float32)
    loss2 = iou_loss_pallas(y_pred2, y2, tile_n=128)
    jax.block_until_ready(loss2)
    ref2 = iou_loss_ref(y_pred2, y2)
    assert jnp.allclose(loss2, ref2, rtol=1e-5, atol=1e-6), (loss2, ref2)

    print("KERNEL_OK")
</pallas_src>

<mosaic_0001>
module attributes {stable_mosaic.version = 11 : i64} {
  func.func @_iou_sums_kernel(%arg0: i32, %arg1: memref<16x128xf32, #tpu.memory_space<vmem>>, %arg2: memref<16x128xf32, #tpu.memory_space<vmem>>, %arg3: memref<16x1xf32, #tpu.memory_space<vmem>>, %arg4: memref<16x1xf32, #tpu.memory_space<vmem>>, %arg5: memref<16x1xf32, #tpu.memory_space<vmem>>) attributes {dimension_semantics = [#tpu.dimension_semantics<arbitrary>], iteration_bounds = array<i64: 1>, scalar_prefetch = 0 : i64, scratch_operands = 0 : i64, tpu.core_type = #tpu.core_type<tc>, window_params = [{transform_indices = @transform_0, window_bounds = array<i64: 16, 128>}, {transform_indices = @transform_1, window_bounds = array<i64: 16, 128>}, {pipeline_mode = #tpu.pipeline_mode<synchronous>, transform_indices = @transform_2, window_bounds = array<i64: 16, 1>}, {pipeline_mode = #tpu.pipeline_mode<synchronous>, transform_indices = @transform_3, window_bounds = array<i64: 16, 1>}, {pipeline_mode = #tpu.pipeline_mode<synchronous>, transform_indices = @transform_4, window_bounds = array<i64: 16, 1>}]} {
    %c0_i32 = arith.constant 0 : i32
    %0 = arith.cmpi eq, %arg0, %c0_i32 : i32
    %1 = arith.extui %0 : i1 to i32
    %c0_i32_0 = arith.constant 0 : i32
    %2 = arith.cmpi ne, %1, %c0_i32_0 : i32
    scf.if %2 {
      %cst_18 = arith.constant 0.000000e+00 : f32
      %23 = vector.broadcast %cst_18 : f32 to vector<16x1xf32>
      %c0_19 = arith.constant 0 : index
      %c0_20 = arith.constant 0 : index
      %24 = vector.load %arg3[%c0_19, %c0_20] : memref<16x1xf32, #tpu.memory_space<vmem>>, vector<16x1xf32>
      tpu.vector_store %arg3[%c0_19, %c0_20], %23 {strides = array<i32>} : memref<16x1xf32, #tpu.memory_space<vmem>>, vector<16x1xf32>,
      %cst_21 = arith.constant 0.000000e+00 : f32
      %25 = vector.broadcast %cst_21 : f32 to vector<16x1xf32>
      %c0_22 = arith.constant 0 : index
      %c0_23 = arith.constant 0 : index
      %26 = vector.load %arg4[%c0_22, %c0_23] : memref<16x1xf32, #tpu.memory_space<vmem>>, vector<16x1xf32>
      tpu.vector_store %arg4[%c0_22, %c0_23], %25 {strides = array<i32>} : memref<16x1xf32, #tpu.memory_space<vmem>>, vector<16x1xf32>,
      %cst_24 = arith.constant 0.000000e+00 : f32
      %27 = vector.broadcast %cst_24 : f32 to vector<16x1xf32>
      %c0_25 = arith.constant 0 : index
      %c0_26 = arith.constant 0 : index
      %28 = vector.load %arg5[%c0_25, %c0_26] : memref<16x1xf32, #tpu.memory_space<vmem>>, vector<16x1xf32>
      tpu.vector_store %arg5[%c0_25, %c0_26], %27 {strides = array<i32>} : memref<16x1xf32, #tpu.memory_space<vmem>>, vector<16x1xf32>,
    } else {
    }
    %c0 = arith.constant 0 : index
    %c0_1 = arith.constant 0 : index
    %3 = vector.load %arg1[%c0, %c0_1] : memref<16x128xf32, #tpu.memory_space<vmem>>, vector<16x128xf32>
    %c0_2 = arith.constant 0 : index
    %c0_3 = arith.constant 0 : index
    %4 = vector.load %arg2[%c0_2, %c0_3] : memref<16x128xf32, #tpu.memory_space<vmem>>, vector<16x128xf32>
    %c0_4 = arith.constant 0 : index
    %c0_5 = arith.constant 0 : index
    %5 = vector.load %arg3[%c0_4, %c0_5] : memref<16x1xf32, #tpu.memory_space<vmem>>, vector<16x1xf32>
    %6 = arith.mulf %4, %3 : vector<16x128xf32>
    %cst = arith.constant dense<0.000000e+00> : vector<16xf32>
    %7 = vector.multi_reduction <add>, %6, %cst [1] : vector<16x128xf32> to vector<16xf32>
    %8 = vector.shape_cast %7 : vector<16xf32> to vector<16x1xf32>
    %9 = arith.addf %5, %8 : vector<16x1xf32>
    %c0_6 = arith.constant 0 : index
    %c0_7 = arith.constant 0 : index
    %10 = vector.load %arg3[%c0_6, %c0_7] : memref<16x1xf32, #tpu.memory_space<vmem>>, vector<16x1xf32>
    tpu.vector_store %arg3[%c0_6, %c0_7], %9 {strides = array<i32>} : memref<16x1xf32, #tpu.memory_space<vmem>>, vector<16x1xf32>,
    %c0_8 = arith.constant 0 : index
    %c0_9 = arith.constant 0 : index
    %11 = vector.load %arg4[%c0_8, %c0_9] : memref<16x1xf32, #tpu.memory_space<vmem>>, vector<16x1xf32>
    %12 = arith.mulf %4, %4 : vector<16x128xf32>
    %cst_10 = arith.constant dense<0.000000e+00> : vector<16xf32>
    %13 = vector.multi_reduction <add>, %12, %cst_10 [1] : vector<16x128xf32> to vector<16xf32>
    %14 = vector.shape_cast %13 : vector<16xf32> to vector<16x1xf32>
    %15 = arith.addf %11, %14 : vector<16x1xf32>
    %c0_11 = arith.constant 0 : index
    %c0_12 = arith.constant 0 : index
    %16 = vector.load %arg4[%c0_11, %c0_12] : memref<16x1xf32, #tpu.memory_space<vmem>>, vector<16x1xf32>
    tpu.vector_store %arg4[%c0_11, %c0_12], %15 {strides = array<i32>} : memref<16x1xf32, #tpu.memory_space<vmem>>, vector<16x1xf32>,
    %c0_13 = arith.constant 0 : index
    %c0_14 = arith.constant 0 : index
    %17 = vector.load %arg5[%c0_13, %c0_14] : memref<16x1xf32, #tpu.memory_space<vmem>>, vector<16x1xf32>
    %18 = arith.mulf %3, %3 : vector<16x128xf32>
    %cst_15 = arith.constant dense<0.000000e+00> : vector<16xf32>
    %19 = vector.multi_reduction <add>, %18, %cst_15 [1] : vector<16x128xf32> to vector<16xf32>
    %20 = vector.shape_cast %19 : vector<16xf32> to vector<16x1xf32>
    %21 = arith.addf %17, %20 : vector<16x1xf32>
    %c0_16 = arith.constant 0 : index
    %c0_17 = arith.constant 0 : index
    %22 = vector.load %arg5[%c0_16, %c0_17] : memref<16x1xf32, #tpu.memory_space<vmem>>, vector<16x1xf32>
    tpu.vector_store %arg5[%c0_16, %c0_17], %21 {strides = array<i32>} : memref<16x1xf32, #tpu.memory_space<vmem>>, vector<16x1xf32>,
    return
  }
  func.func @transform_0(%arg0: i32) -> (i32, i32) {
    %c0_i32 = arith.constant 0 : i32
    %c0_i32_0 = arith.constant 0 : i32
    return %c0_i32, %arg0 : i32, i32
  }
  func.func @transform_1(%arg0: i32) -> (i32, i32) {
    %c0_i32 = arith.constant 0 : i32
    %c0_i32_0 = arith.constant 0 : i32
    return %c0_i32, %arg0 : i32, i32
  }
  func.func @transform_2(%arg0: i32) -> (i32, i32) {
    %c0_i32 = arith.constant 0 : i32
    %c0_i32_0 = arith.constant 0 : i32
    %c0_i32_1 = arith.constant 0 : i32
    return %c0_i32, %c0_i32_0 : i32, i32
  }
  func.func @transform_3(%arg0: i32) -> (i32, i32) {
    %c0_i32 = arith.constant 0 : i32
    %c0_i32_0 = arith.constant 0 : i32
    %c0_i32_1 = arith.constant 0 : i32
    return %c0_i32, %c0_i32_0 : i32, i32
  }
  func.func @transform_4(%arg0: i32) -> (i32, i32) {
    %c0_i32 = arith.constant 0 : i32
    %c0_i32_0 = arith.constant 0 : i32
    %c0_i32_1 = arith.constant 0 : i32
    return %c0_i32, %c0_i32_0 : i32, i32
  }
}

</mosaic_0001>

<bundles_post_ra>
// kernel: iou_loss_pallas.1
= control target key start
LH: loop header
LB: loop body
LE: loop exit
PB: predicated region body
PF: predicated region fallthrough
CT: control target
= control target key end

     0   :  { %vm18_vm0 = vcmask 7168   ;;  %v79_v3 = vmov 0.0   ;;  %s183_s1 = inlined_call_operand.vmem [shape: f32[16,128], index: 1, kind: input, shape index: {}]   ;;  %s184_s0 = inlined_call_operand.vmem [shape: f32[16,128], index: 0, kind: input, shape index: {}]   ;;  %s185_s3 = inlined_call_operand.vmem [shape: f32[16,1], index: 3, kind: output, shape index: {1}]   ;;  %s186_s2 = inlined_call_operand.vmem [shape: f32[16,1], index: 2, kind: output, shape index: {0}]   ;;  %s187_s4 = inlined_call_operand.vmem [shape: f32[16,1], index: 4, kind: output, shape index: {2}]  }
   0x1   :  { %v27_v0 = vld [vmem:[%s183_s1] sm:$0xff]  ;;  %v28_v2 = vld [vmem:[%s183_s1 + $0x8] sm:$0xff]  ;;  %21 = vst.msk [vmem:[%s185_s3] sm:$0xff] %vm18_vm0, %v79_v3  ;;  %22 = vst.msk [vmem:[%s185_s3 + $0x8] sm:$0xff] %vm18_vm0, %v79_v3 }
   0x2   :  { %v25_v1 = vld [vmem:[%s184_s0] sm:$0xff]  ;;  %v44_v4 = vmul.f32 %v27_v0, %v27_v0  ;;  %v26_v6 = vld [vmem:[%s184_s0 + $0x8] sm:$0xff]  ;;  %v45_v7 = vmul.f32 %v28_v2, %v28_v2  ;;  %19 = vst.msk [vmem:[%s186_s2] sm:$0xff] %vm18_vm0, %v79_v3  ;;  %20 = vst.msk [vmem:[%s186_s2 + $0x8] sm:$0xff] %vm18_vm0, %v79_v3 }
   0x3   :  { %v31_v5 = vmul.f32 %v27_v0, %v25_v1  ;;  %v32_v8 = vmul.f32 %v28_v2, %v26_v6  ;;  %v57_v9 = vmul.f32 %v26_v6, %v26_v6  ;;  %v56_v10 = vmul.f32 %v25_v1, %v25_v1  ;;  %24 = vst.msk [vmem:[%s187_s4 + $0x8] sm:$0xff] %vm18_vm0, %v79_v3 }
   0x4   :  { %46 = vadd.xlane.f32.xlu1 %v44_v4  ;;  %23 = vst.msk [vmem:[%s187_s4] sm:$0xff] %vm18_vm0, %v79_v3 }
   0x5   :  { %33 = vadd.xlane.f32.xlu0 %v31_v5 }
   0x8   :  { %48 = vadd.xlane.f32.xlu1 %v45_v7  ;;  %v42_v11 = vld [vmem:[%s185_s3] sm:$0xff]  ;;  %v43_v17 = vld [vmem:[%s185_s3 + $0x8] sm:$0xff] }
   0x9   :  { %35 = vadd.xlane.f32.xlu0 %v32_v8  ;;  %v29_v12 = vld [vmem:[%s186_s2] sm:$0xff]  ;;  %v30_v18 = vld [vmem:[%s186_s2 + $0x8] sm:$0xff] }
   0xa   :  { %v55_v23 = vld [vmem:[%s187_s4 + $0x8] sm:$0xff] }
   0xb   :  { %v54_v24 = vld [vmem:[%s187_s4] sm:$0xff] }
   0xc   :  { %60 = vadd.xlane.f32.xlu1 %v57_v9 }
   0xd   :  { %58 = vadd.xlane.f32.xlu0 %v56_v10 }
  0x91   :  { %v47_v13 = vpop.xlane.xlu1 %46 }
  0x92   :  { %v34_v14 = vpop.xlane.xlu0 %33  ;;  %v50_v15 = vadd.f32 %v47_v13, %v42_v11 }
  0x93   :  { %v37_v16 = vadd.f32 %v34_v14, %v29_v12 }
  0x94   :  { %52 = vst.msk [vmem:[%s185_s3] sm:$0xff] %vm18_vm0, %v50_v15 }
  0x95   :  { %40 = vst.msk [vmem:[%s186_s2] sm:$0xff] %vm18_vm0, %v37_v16  ;;  %v49_v19 = vpop.xlane.xlu1 %48 }
  0x96   :  { %v36_v20 = vpop.xlane.xlu0 %35  ;;  %v51_v21 = vadd.f32 %v49_v19, %v43_v17 }
  0x97   :  { %v38_v22 = vadd.f32 %v36_v20, %v30_v18 }
  0x98   :  { %53 = vst.msk [vmem:[%s185_s3 + $0x8] sm:$0xff] %vm18_vm0, %v51_v21 }
  0x99   :  { %41 = vst.msk [vmem:[%s186_s2 + $0x8] sm:$0xff] %vm18_vm0, %v38_v22  ;;  %v61_v25 = vpop.xlane.xlu1 %60 }
  0x9a   :  { %v59_v26 = vpop.xlane.xlu0 %58  ;;  %v63_v27 = vadd.f32 %v61_v25, %v55_v23 }
  0x9b   :  { %v62_v28 = vadd.f32 %v59_v26, %v54_v24 }
  0x9c   :  { %65 = vst.msk [vmem:[%s187_s4 + $0x8] sm:$0xff] %vm18_vm0, %v63_v27 }
  0x9d   :  { %64 = vst.msk [vmem:[%s187_s4] sm:$0xff] %vm18_vm0, %v62_v28 }

</bundles_post_ra>
